<compile_context>
chip_gen: v6e
topology: v6e:2x2x1
jax: 0.10.0
libtpu: 0.0.40
codegen_flags: <defaults>
</compile_context>

<pallas_src>
import numpy as np
import jax
import jax.numpy as jnp
from jax.experimental import pallas as pl
from jax.experimental.pallas import tpu as pltpu

WINDOW_DIM = 8
HIDDEN_DIM = 128
LATENT_DIM = 32
BATCH = 2
MAX_ROW_BLOCK = 256   # windows per grid step for large batches (sweepable)

# Output / input lane layout of the packed 128-lane slabs.
MU_LANE = 32      # mu     -> out lanes 32:64
LV_LANE = 64      # logvar -> out lanes 64:96
EPS_LANE = 96     # eps    -> in  lanes 96:128   (x sits at in lanes 0:8)

# Per-layer row counts inside the packed weight slab (all multiples of 8, so
# every static slice is sublane-tile aligned -> no partial-tile copies).
_LAYER_ROWS = (8, 128, 128, 128, 32, 128, 128, 128)
_LAYER_OFFS = tuple(int(np.sum(_LAYER_ROWS[:i])) for i in range(len(_LAYER_ROWS)))
W_SLAB_ROWS = int(np.sum(_LAYER_ROWS))  # 808


def _round_up(n, m):
    return ((n + m - 1) // m) * m


# ----------------------------------------------------------------------------
# Offline glue: Conv1d / ConvTranspose1d (NCW) as dense matrices on the
# channel-major flattened feature axis:  out_flat = in_flat @ M + bvec
# ----------------------------------------------------------------------------
def conv1d_to_dense(W, b, Lin, stride, padding):
    # W: (Co, Ci, K) torch Conv1d weight; out[b,co,lo] uses x[b,ci, lo*s - p + k]
    Co, Ci, K = W.shape
    Lout = (Lin + 2 * padding - K) // stride + 1
    M = np.zeros((Ci * Lin, Co * Lout), dtype=np.float32)
    for co in range(Co):
        for lo in range(Lout):
            for ci in range(Ci):
                for k in range(K):
                    li = lo * stride - padding + k
                    if 0 <= li < Lin:
                        M[ci * Lin + li, co * Lout + lo] = W[co, ci, k]
    bvec = np.repeat(b.astype(np.float32), Lout)
    return M, bvec, Lout


def convT1d_to_dense(W, b, Lin, stride, padding, output_padding=0):
    # W: (Cin, Cout, K) torch ConvTranspose1d weight;
    # out[b,co,lo] += x[b,ci,li] * W[ci,co,k]  where lo = li*s - p + k
    Cin, Cout, K = W.shape
    Lout = (Lin - 1) * stride - 2 * padding + K + output_padding
    M = np.zeros((Cin * Lin, Cout * Lout), dtype=np.float32)
    for ci in range(Cin):
        for li in range(Lin):
            for co in range(Cout):
                for k in range(K):
                    lo = li * stride - padding + k
                    if 0 <= lo < Lout:
                        M[ci * Lin + li, co * Lout + lo] = W[ci, co, k]
    bvec = np.repeat(b.astype(np.float32), Lout)
    return M, bvec, Lout


def build_params():
    """Deterministic synthetic parameters with the exact torch layer shapes.

    Returns (w_slab, b_slab, raw) where raw holds the UNFOLDED per-layer dense
    matrices used by the pure-JAX reference (numerical check of the folds).
    """
    rng = np.random.default_rng(0)

    def w(*shape, scale=0.1):
        return (scale * rng.standard_normal(shape)).astype(np.float32)

    # ----- encoder -----
    # conv1: Conv1d(1, 32, k=4, s=2, p=1): L 8 -> 4
    Mc1, bc1, _ = conv1d_to_dense(w(32, 1, 4), w(32), Lin=8, stride=2, padding=1)
    # conv_layers[0]: Conv1d(32, 64, k=3, s=2, p=1): L 4 -> 2
    Ml0c, bl0c, _ = conv1d_to_dense(w(64, 32, 3), w(64), Lin=4, stride=2, padding=1)
    # skip_connections[0]: Conv1d(32, 64, k=1, s=2): L 4 -> 2
    Ml0s, bl0s, _ = conv1d_to_dense(w(64, 32, 1), w(64), Lin=4, stride=2, padding=0)
    # conv_layers[1]: Conv1d(64, 128, k=3, s=2, p=1): L 2 -> 1
    Ml1c, bl1c, _ = conv1d_to_dense(w(128, 64, 3), w(128), Lin=2, stride=2, padding=1)
    # skip_connections[1]: Conv1d(64, 128, k=1, s=2): L 2 -> 1
    Ml1s, bl1s, _ = conv1d_to_dense(w(128, 64, 1), w(128), Lin=2, stride=2, padding=0)
    # fc_mu / fc_logvar: Linear(128, 32)  (stored transposed for x @ W.T)
    Wmu, bmu = w(LATENT_DIM, HIDDEN_DIM).T.copy(), w(LATENT_DIM)
    Wlv, blv = w(LATENT_DIM, HIDDEN_DIM).T.copy(), w(LATENT_DIM)
    # ----- decoder -----
    # fc_decoder: Linear(32, 128)
    Wdec, bdec = w(HIDDEN_DIM, LATENT_DIM).T.copy(), w(HIDDEN_DIM)
    # deconv1: ConvTranspose1d(128, 64, k=4, s=2, p=1): L 1 -> 2
    Md1, bd1, _ = convT1d_to_dense(w(128, 64, 4), w(64), Lin=1, stride=2, padding=1)
    # deconv_layers[0]: ConvTranspose1d(64, 32, k=4, s=2, p=1): L 2 -> 4
    Mdl0, bdl0, _ = convT1d_to_dense(w(64, 32, 4), w(32), Lin=2, stride=2, padding=1)
    # skip_connections_decoder[0]: ConvTranspose1d(64, 32, k=1, s=2, op=1): L 2 -> 4
    Mdl0s, bdl0s, _ = convT1d_to_dense(w(64, 32, 1), w(32), Lin=2, stride=2, padding=0,
                                       output_padding=1)
    # deconv3: ConvTranspose1d(32, 1, k=4, s=2, p=1): L 4 -> 8
    Md3, bd3, _ = convT1d_to_dense(w(32, 1, 4), w(1), Lin=4, stride=2, padding=1)

    raw = dict(Mc1=Mc1, bc1=bc1, Ml0c=Ml0c, bl0c=bl0c, Ml0s=Ml0s, bl0s=bl0s,
               Ml1c=Ml1c, bl1c=bl1c, Ml1s=Ml1s, bl1s=bl1s,
               Wmu=Wmu, bmu=bmu, Wlv=Wlv, blv=blv, Wdec=Wdec, bdec=bdec,
               Md1=Md1, bd1=bd1, Mdl0=Mdl0, bdl0=bdl0, Mdl0s=Mdl0s, bdl0s=bdl0s,
               Md3=Md3, bd3=bd3)

    # ---- fold skips & fc_mu/fc_logvar, pad to 128 lanes, pack into slabs ----
    Wmulv = np.zeros((HIDDEN_DIM, 128), dtype=np.float32)
    Wmulv[:, MU_LANE:MU_LANE + LATENT_DIM] = Wmu        # mu  -> output lanes 32:64
    Wmulv[:, LV_LANE:LV_LANE + LATENT_DIM] = Wlv        # lv  -> output lanes 64:96
    bmulv = np.zeros((128,), dtype=np.float32)
    bmulv[MU_LANE:MU_LANE + LATENT_DIM] = bmu
    bmulv[LV_LANE:LV_LANE + LATENT_DIM] = blv

    Md3p = np.zeros((128, 128), dtype=np.float32)
    Md3p[:, :WINDOW_DIM] = Md3                          # recon -> output lanes 0:8
    bd3p = np.zeros((128,), dtype=np.float32)
    bd3p[:WINDOW_DIM] = bd3

    layer_ws = [
        Mc1,                 # 0: conv1                      (8,   128)
        Ml0c + Ml0s,         # 1: conv_layers[0] + skip[0]   (128, 128)
        Ml1c + Ml1s,         # 2: conv_layers[1] + skip[1]   (128, 128)
        Wmulv,               # 3: fc_mu | fc_logvar fused    (128, 128)
        Wdec,                # 4: fc_decoder                 (32,  128)
        Md1,                 # 5: deconv1                    (128, 128)
        Mdl0 + Mdl0s,        # 6: deconv_layers[0]+skip[0]   (128, 128)
        Md3p,                # 7: deconv3 (padded)           (128, 128)
    ]
    layer_bs = [bc1, bl0c + bl0s, bl1c + bl1s, bmulv, bdec, bd1, bdl0 + bdl0s, bd3p]

    w_slab = np.concatenate(layer_ws, axis=0)              # (808, 128)
    assert w_slab.shape == (W_SLAB_ROWS, 128)
    b_slab = np.stack(layer_bs, axis=0)                    # (8, 128)
    return jnp.asarray(w_slab), jnp.asarray(b_slab), raw


# ----------------------------------------------------------------------------
# Fused Pallas kernel: full VAE forward on one row-block of windows.
# ----------------------------------------------------------------------------
def vae_kernel(in_ref, w_ref, b_ref, out_ref):
    relu = lambda v: jnp.maximum(v, 0.0)

    def layer(a, li):
        w = w_ref[pl.ds(_LAYER_OFFS[li], _LAYER_ROWS[li]), :]
        b = b_ref[pl.ds(li, 1), :]
        return jnp.dot(a, w, preferred_element_type=jnp.float32) + b

    # ---- encode ----
    x = in_ref[:, 0:WINDOW_DIM]                            # (RB, 8)  = 1ch x len8
    h = relu(layer(x, 0))                # (RB, 128)   = 32ch x len4
    h = relu(layer(h, 1))                # (RB, 128)   = 64ch x len2  (conv+skip folded)
    h = relu(layer(h, 2))                # (RB, 128)   = 128ch x len1 (conv+skip folded)
    mulv = layer(h, 3)                   # (RB, 128): mu @ lanes 32:64, logvar @ 64:96
    mu = mulv[:, MU_LANE:MU_LANE + LATENT_DIM]             # (RB, 32)
    logvar = mulv[:, LV_LANE:LV_LANE + LATENT_DIM]         # (RB, 32)

    # ---- reparameterize ----
    eps = in_ref[:, EPS_LANE:EPS_LANE + LATENT_DIM]        # (RB, 32)
    z = mu + eps * jnp.exp(0.5 * logvar)                   # (RB, 32)

    # ---- decode ----
    hd = relu(layer(z, 4))               # (RB, 128)   = 128ch x len1
    hd = relu(layer(hd, 5))              # (RB, 128)   = 64ch x len2
    hd = relu(layer(hd, 6))              # (RB, 128)   = 32ch x len4 (deconv+skip folded)
    recon = layer(hd, 7)                 # (RB, 128): recon @ lanes 0:8, rest zero

    # Single lane-dense (RB, 128) store: recon | mu | logvar, padding lanes zero.
    out_ref[...] = recon + mulv


def vae_forward(x, eps, w_slab, b_slab, *, max_row_block=MAX_ROW_BLOCK):
    B = x.shape[0]
    # Adaptive row block: tiny batches pad only to a multiple of 8; large
    # batches stream in max_row_block-row blocks (MXU fill + per-step amortize).
    rb = min(max_row_block, _round_up(B, 8))
    B_pad = _round_up(B, rb)

    # Pack x and eps into one lane-dense (B_pad, 128) input slab.
    in_slab = jnp.zeros((B_pad, 128), jnp.float32)
    in_slab = in_slab.at[:B, 0:WINDOW_DIM].set(
        x.reshape(B, WINDOW_DIM).astype(jnp.float32))
    in_slab = in_slab.at[:B, EPS_LANE:EPS_LANE + LATENT_DIM].set(
        eps.astype(jnp.float32))

    out = pl.pallas_call(
        vae_kernel,
        out_shape=jax.ShapeDtypeStruct((B_pad, 128), jnp.float32),
        grid_spec=pltpu.PrefetchScalarGridSpec(
            num_scalar_prefetch=0,
            grid=(B_pad // rb,),
            in_specs=[
                pl.BlockSpec((rb, 128), lambda i: (i, 0)),
                # Weight / bias slabs: constant index_map -> DMA'd once,
                # VMEM-resident across all row blocks.
                pl.BlockSpec((W_SLAB_ROWS, 128), lambda i: (0, 0)),
                pl.BlockSpec((8, 128), lambda i: (0, 0)),
            ],
            out_specs=pl.BlockSpec((rb, 128), lambda i: (i, 0)),
        ),
        compiler_params=pltpu.CompilerParams(
            dimension_semantics=("parallel",)),   # shards row blocks across TCs (v7x)
    )(in_slab, w_slab, b_slab)

    recon = out[:B, :WINDOW_DIM].reshape(B, 1, WINDOW_DIM)
    mu = out[:B, MU_LANE:MU_LANE + LATENT_DIM]
    logvar = out[:B, LV_LANE:LV_LANE + LATENT_DIM]
    return recon, mu, logvar


# ----------------------------------------------------------------------------
# Pure-JAX reference on the UNFOLDED dense matrices (checks the offline folds,
# the packed slabs and the lane-dense I/O layout against the original lowering).
# ----------------------------------------------------------------------------
def forward_dense_ref(x_flat, eps, raw):
    r = {k: jnp.asarray(v) for k, v in raw.items()}
    relu = lambda v: jnp.maximum(v, 0.0)
    h = relu(x_flat @ r["Mc1"] + r["bc1"])
    h = relu(h @ r["Ml0c"] + r["bl0c"] + h @ r["Ml0s"] + r["bl0s"])
    h = relu(h @ r["Ml1c"] + r["bl1c"] + h @ r["Ml1s"] + r["bl1s"])
    mu = h @ r["Wmu"] + r["bmu"]
    logvar = h @ r["Wlv"] + r["blv"]
    z = mu + eps * jnp.exp(0.5 * logvar)
    hd = relu(z @ r["Wdec"] + r["bdec"])
    hd = relu(hd @ r["Md1"] + r["bd1"])
    hd = relu(hd @ r["Mdl0"] + r["bdl0"] + hd @ r["Mdl0s"] + r["bdl0s"])
    return hd @ r["Md3"] + r["bd3"], mu, logvar


if __name__ == "__main__":
    key = jax.random.PRNGKey(0)
    kx, keps = jax.random.split(key)
    x = jax.random.normal(kx, (BATCH, 1, WINDOW_DIM), dtype=jnp.float32)
    eps = jax.random.normal(keps, (BATCH, LATENT_DIM), dtype=jnp.float32)

    w_slab, b_slab, raw = build_params()
    recon, mu, logvar = vae_forward(x, eps, w_slab, b_slab)
    jax.block_until_ready((recon, mu, logvar))

    assert recon.shape == (BATCH, 1, WINDOW_DIM)
    assert mu.shape == (BATCH, LATENT_DIM) and logvar.shape == (BATCH, LATENT_DIM)

    r_ref, mu_r, lv_r = forward_dense_ref(x.reshape(BATCH, -1), eps, raw)
    assert np.allclose(np.asarray(recon).reshape(BATCH, -1), np.asarray(r_ref),
                       rtol=1e-4, atol=1e-4)
    assert np.allclose(np.asarray(mu), np.asarray(mu_r), rtol=1e-4, atol=1e-4)
    assert np.allclose(np.asarray(logvar), np.asarray(lv_r), rtol=1e-4, atol=1e-4)

    print("KERNEL_OK")
</pallas_src>

<mosaic_0001>
module attributes {stable_mosaic.version = 11 : i64} {
  func.func @vae_kernel(%arg0: i32, %arg1: memref<8x128xf32, #tpu.memory_space<vmem>>, %arg2: memref<808x128xf32, #tpu.memory_space<vmem>>, %arg3: memref<8x128xf32, #tpu.memory_space<vmem>>, %arg4: memref<8x128xf32, #tpu.memory_space<vmem>>) attributes {dimension_semantics = [#tpu.dimension_semantics<parallel>], iteration_bounds = array<i64: 1>, scalar_prefetch = 0 : i64, scratch_operands = 0 : i64, tpu.core_type = #tpu.core_type<tc>, window_params = [{transform_indices = @transform_0, window_bounds = array<i64: 8, 128>}, {pipeline_mode = #tpu.pipeline_mode<synchronous>, transform_indices = @transform_1, window_bounds = array<i64: 808, 128>}, {pipeline_mode = #tpu.pipeline_mode<synchronous>, transform_indices = @transform_2, window_bounds = array<i64: 8, 128>}, {transform_indices = @transform_3, window_bounds = array<i64: 8, 128>}]} {
    %c0 = arith.constant 0 : index
    %c0_0 = arith.constant 0 : index
    %0 = vector.load %arg1[%c0, %c0_0] : memref<8x128xf32, #tpu.memory_space<vmem>>, vector<8x8xf32>
    %c0_1 = arith.constant 0 : index
    %c0_2 = arith.constant 0 : index
    %1 = vector.load %arg2[%c0_1, %c0_2] : memref<808x128xf32, #tpu.memory_space<vmem>>, vector<8x128xf32>
    %c0_3 = arith.constant 0 : index
    %c0_4 = arith.constant 0 : index
    %2 = vector.load %arg3[%c0_3, %c0_4] : memref<8x128xf32, #tpu.memory_space<vmem>>, vector<1x128xf32>
    %cst = arith.constant dense<0.000000e+00> : vector<8x128xf32>
    %3 = tpu.matmul %0, %1, %cst {dimension_numbers = #tpu.dot_dimension_numbers<[1], [0], [0], [1], [0, 0, 1, 1], [], []>} : vector<8x8xf32>, vector<8x128xf32>, vector<8x128xf32> -> vector<8x128xf32>
    %4 = vector.broadcast %2 : vector<1x128xf32> to vector<8x128xf32>
    %5 = arith.addf %3, %4 : vector<8x128xf32>
    %cst_5 = arith.constant 0.000000e+00 : f32
    %6 = vector.broadcast %cst_5 : f32 to vector<8x128xf32>
    %7 = arith.maximumf %5, %6 : vector<8x128xf32>
    %c8 = arith.constant 8 : index
    %c0_6 = arith.constant 0 : index
    %8 = vector.load %arg2[%c8, %c0_6] : memref<808x128xf32, #tpu.memory_space<vmem>>, vector<128x128xf32>
    %c1 = arith.constant 1 : index
    %c0_7 = arith.constant 0 : index
    %9 = vector.load %arg3[%c1, %c0_7] : memref<8x128xf32, #tpu.memory_space<vmem>>, vector<1x128xf32>
    %cst_8 = arith.constant dense<0.000000e+00> : vector<8x128xf32>
    %10 = tpu.matmul %7, %8, %cst_8 {dimension_numbers = #tpu.dot_dimension_numbers<[1], [0], [0], [1], [0, 0, 1, 1], [], []>} : vector<8x128xf32>, vector<128x128xf32>, vector<8x128xf32> -> vector<8x128xf32>
    %11 = vector.broadcast %9 : vector<1x128xf32> to vector<8x128xf32>
    %12 = arith.addf %10, %11 : vector<8x128xf32>
    %cst_9 = arith.constant 0.000000e+00 : f32
    %13 = vector.broadcast %cst_9 : f32 to vector<8x128xf32>
    %14 = arith.maximumf %12, %13 : vector<8x128xf32>
    %c136 = arith.constant 136 : index
    %c0_10 = arith.constant 0 : index
    %15 = vector.load %arg2[%c136, %c0_10] : memref<808x128xf32, #tpu.memory_space<vmem>>, vector<128x128xf32>
    %c2 = arith.constant 2 : index
    %c0_11 = arith.constant 0 : index
    %16 = vector.load %arg3[%c2, %c0_11] : memref<8x128xf32, #tpu.memory_space<vmem>>, vector<1x128xf32>
    %cst_12 = arith.constant dense<0.000000e+00> : vector<8x128xf32>
    %17 = tpu.matmul %14, %15, %cst_12 {dimension_numbers = #tpu.dot_dimension_numbers<[1], [0], [0], [1], [0, 0, 1, 1], [], []>} : vector<8x128xf32>, vector<128x128xf32>, vector<8x128xf32> -> vector<8x128xf32>
    %18 = vector.broadcast %16 : vector<1x128xf32> to vector<8x128xf32>
    %19 = arith.addf %17, %18 : vector<8x128xf32>
    %cst_13 = arith.constant 0.000000e+00 : f32
    %20 = vector.broadcast %cst_13 : f32 to vector<8x128xf32>
    %21 = arith.maximumf %19, %20 : vector<8x128xf32>
    %c264 = arith.constant 264 : index
    %c0_14 = arith.constant 0 : index
    %22 = vector.load %arg2[%c264, %c0_14] : memref<808x128xf32, #tpu.memory_space<vmem>>, vector<128x128xf32>
    %c3 = arith.constant 3 : index
    %c0_15 = arith.constant 0 : index
    %23 = vector.load %arg3[%c3, %c0_15] : memref<8x128xf32, #tpu.memory_space<vmem>>, vector<1x128xf32>
    %cst_16 = arith.constant dense<0.000000e+00> : vector<8x128xf32>
    %24 = tpu.matmul %21, %22, %cst_16 {dimension_numbers = #tpu.dot_dimension_numbers<[1], [0], [0], [1], [0, 0, 1, 1], [], []>} : vector<8x128xf32>, vector<128x128xf32>, vector<8x128xf32> -> vector<8x128xf32>
    %25 = vector.broadcast %23 : vector<1x128xf32> to vector<8x128xf32>
    %26 = arith.addf %24, %25 : vector<8x128xf32>
    %27 = vector.extract_strided_slice %26 {offsets = [0, 32], sizes = [8, 32], strides = [1, 1]} : vector<8x128xf32> to vector<8x32xf32>
    %28 = vector.extract_strided_slice %26 {offsets = [0, 64], sizes = [8, 32], strides = [1, 1]} : vector<8x128xf32> to vector<8x32xf32>
    %c0_17 = arith.constant 0 : index
    %c96 = arith.constant 96 : index
    %29 = vector.load %arg1[%c0_17, %c96] : memref<8x128xf32, #tpu.memory_space<vmem>>, vector<8x32xf32>
    %cst_18 = arith.constant 5.000000e-01 : f32
    %30 = vector.broadcast %cst_18 : f32 to vector<8x32xf32>
    %31 = arith.mulf %30, %28 : vector<8x32xf32>
    %32 = math.exp %31 : vector<8x32xf32>
    %33 = arith.mulf %29, %32 : vector<8x32xf32>
    %34 = arith.addf %27, %33 : vector<8x32xf32>
    %c392 = arith.constant 392 : index
    %c0_19 = arith.constant 0 : index
    %35 = vector.load %arg2[%c392, %c0_19] : memref<808x128xf32, #tpu.memory_space<vmem>>, vector<32x128xf32>
    %c4 = arith.constant 4 : index
    %c0_20 = arith.constant 0 : index
    %36 = vector.load %arg3[%c4, %c0_20] : memref<8x128xf32, #tpu.memory_space<vmem>>, vector<1x128xf32>
    %cst_21 = arith.constant dense<0.000000e+00> : vector<8x128xf32>
    %37 = tpu.matmul %34, %35, %cst_21 {dimension_numbers = #tpu.dot_dimension_numbers<[1], [0], [0], [1], [0, 0, 1, 1], [], []>} : vector<8x32xf32>, vector<32x128xf32>, vector<8x128xf32> -> vector<8x128xf32>
    %38 = vector.broadcast %36 : vector<1x128xf32> to vector<8x128xf32>
    %39 = arith.addf %37, %38 : vector<8x128xf32>
    %cst_22 = arith.constant 0.000000e+00 : f32
    %40 = vector.broadcast %cst_22 : f32 to vector<8x128xf32>
    %41 = arith.maximumf %39, %40 : vector<8x128xf32>
    %c424 = arith.constant 424 : index
    %c0_23 = arith.constant 0 : index
    %42 = vector.load %arg2[%c424, %c0_23] : memref<808x128xf32, #tpu.memory_space<vmem>>, vector<128x128xf32>
    %c5 = arith.constant 5 : index
    %c0_24 = arith.constant 0 : index
    %43 = vector.load %arg3[%c5, %c0_24] : memref<8x128xf32, #tpu.memory_space<vmem>>, vector<1x128xf32>
    %cst_25 = arith.constant dense<0.000000e+00> : vector<8x128xf32>
    %44 = tpu.matmul %41, %42, %cst_25 {dimension_numbers = #tpu.dot_dimension_numbers<[1], [0], [0], [1], [0, 0, 1, 1], [], []>} : vector<8x128xf32>, vector<128x128xf32>, vector<8x128xf32> -> vector<8x128xf32>
    %45 = vector.broadcast %43 : vector<1x128xf32> to vector<8x128xf32>
    %46 = arith.addf %44, %45 : vector<8x128xf32>
    %cst_26 = arith.constant 0.000000e+00 : f32
    %47 = vector.broadcast %cst_26 : f32 to vector<8x128xf32>
    %48 = arith.maximumf %46, %47 : vector<8x128xf32>
    %c552 = arith.constant 552 : index
    %c0_27 = arith.constant 0 : index
    %49 = vector.load %arg2[%c552, %c0_27] : memref<808x128xf32, #tpu.memory_space<vmem>>, vector<128x128xf32>
    %c6 = arith.constant 6 : index
    %c0_28 = arith.constant 0 : index
    %50 = vector.load %arg3[%c6, %c0_28] : memref<8x128xf32, #tpu.memory_space<vmem>>, vector<1x128xf32>
    %cst_29 = arith.constant dense<0.000000e+00> : vector<8x128xf32>
    %51 = tpu.matmul %48, %49, %cst_29 {dimension_numbers = #tpu.dot_dimension_numbers<[1], [0], [0], [1], [0, 0, 1, 1], [], []>} : vector<8x128xf32>, vector<128x128xf32>, vector<8x128xf32> -> vector<8x128xf32>
    %52 = vector.broadcast %50 : vector<1x128xf32> to vector<8x128xf32>
    %53 = arith.addf %51, %52 : vector<8x128xf32>
    %cst_30 = arith.constant 0.000000e+00 : f32
    %54 = vector.broadcast %cst_30 : f32 to vector<8x128xf32>
    %55 = arith.maximumf %53, %54 : vector<8x128xf32>
    %c680 = arith.constant 680 : index
    %c0_31 = arith.constant 0 : index
    %56 = vector.load %arg2[%c680, %c0_31] : memref<808x128xf32, #tpu.memory_space<vmem>>, vector<128x128xf32>
    %c7 = arith.constant 7 : index
    %c0_32 = arith.constant 0 : index
    %57 = vector.load %arg3[%c7, %c0_32] : memref<8x128xf32, #tpu.memory_space<vmem>>, vector<1x128xf32>
    %cst_33 = arith.constant dense<0.000000e+00> : vector<8x128xf32>
    %58 = tpu.matmul %55, %56, %cst_33 {dimension_numbers = #tpu.dot_dimension_numbers<[1], [0], [0], [1], [0, 0, 1, 1], [], []>} : vector<8x128xf32>, vector<128x128xf32>, vector<8x128xf32> -> vector<8x128xf32>
    %59 = vector.broadcast %57 : vector<1x128xf32> to vector<8x128xf32>
    %60 = arith.addf %58, %59 : vector<8x128xf32>
    %61 = arith.addf %60, %26 : vector<8x128xf32>
    %c0_34 = arith.constant 0 : index
    %c0_35 = arith.constant 0 : index
    %62 = vector.load %arg4[%c0_34, %c0_35] : memref<8x128xf32, #tpu.memory_space<vmem>>, vector<8x128xf32>
    tpu.vector_store %arg4[%c0_34, %c0_35], %61 {strides = array<i32>} : memref<8x128xf32, #tpu.memory_space<vmem>>, vector<8x128xf32>,
    return
  }
  func.func @transform_0(%arg0: i32) -> (i32, i32) {
    %c0_i32 = arith.constant 0 : i32
    %c0_i32_0 = arith.constant 0 : i32
    return %arg0, %c0_i32 : i32, i32
  }
  func.func @transform_1(%arg0: i32) -> (i32, i32) {
    %c0_i32 = arith.constant 0 : i32
    %c0_i32_0 = arith.constant 0 : i32
    %c0_i32_1 = arith.constant 0 : i32
    return %c0_i32, %c0_i32_0 : i32, i32
  }
  func.func @transform_2(%arg0: i32) -> (i32, i32) {
    %c0_i32 = arith.constant 0 : i32
    %c0_i32_0 = arith.constant 0 : i32
    %c0_i32_1 = arith.constant 0 : i32
    return %c0_i32, %c0_i32_0 : i32, i32
  }
  func.func @transform_3(%arg0: i32) -> (i32, i32) {
    %c0_i32 = arith.constant 0 : i32
    %c0_i32_0 = arith.constant 0 : i32
    return %arg0, %c0_i32 : i32, i32
  }
}

</mosaic_0001>

<bundles_post_ra>
// kernel: tpu_custom_call.1
= control target key start
LH: loop header
LB: loop body
LE: loop exit
PB: predicated region body
PF: predicated region fallthrough
CT: control target
= control target key end

     0   :  { %8 = vsyncpa [#allocation3], 0  ;;  %s1414_s0 = inlined_call_operand.hbm [shape: f32[8,128], index: 0, kind: input, shape index: {}]   ;;  %s1415_s1 = inlined_call_operand.hbm [shape: f32[808,128], index: 1, kind: input, shape index: {}]   ;;  %s1416_s2 = inlined_call_operand.hbm [shape: f32[8,128], index: 2, kind: input, shape index: {}]   ;;  %s1417_s3 = inlined_call_operand.hbm [shape: f32[8,128], index: 3, kind: output, shape index: {}]  }
   0x1   :  { %9 = vsyncpa [#allocation6], 0 }
   0x2   :  { %10 = vsyncpa [#allocation4], 0  ;;  %s1245_s12 = smov [#allocation5]  }
   0x3   :  { %s26_s13 = sshll.u32 %s1245_s12, 4  ;;  %s27_s13 = int_to_ptr.vmem [resolvable:$true] %s26_s13 }
   0x4   :  { %s1167_s14 = scalar_lea.vmem %s27_s13, 12928  ;;  %p1172_p1 = scmp.lt.s32.totalorder %s27_s13, %s27_s13 }
   0x5   :  { %p1168_p0 = scmp.ne.s32.totalorder %s27_s13, %s1167_s14  ;;  %p1173_p2 = scmp.lt.s32.totalorder %s1167_s14, %s1167_s14 }
   0x7   :  { %p1174_p3 = por %p1173_p2, %p1172_p1 }
   0x9   :  { %p1175_p4 = pnand %p1174_p3, %p1168_p0 }
   0xb   :  { %1178 = shalt.err (!%p1175_p4)
}
   0xc   :  { %s1246_s15 = smov 128   ;;  %s1247_s16 = smov 8  }
   0xd   :  { %32 = dma.hbm_to_vmem [thread:$0]  %s1415_s1, 12928, %s27_s13, [#allocation6], %s1246_s15, %s1246_s15, %s1247_s16  }
   0xe   :  { %s1248_s19 = smov [#allocation2]   ;;  %s1249_s21 = smov [#allocation7]  }
   0xf   :  { %s17_s20 = sshll.u32 %s1248_s19, 4  ;;  %s39_s22 = sshll.u32 %s1249_s21, 4  ;;  %s18_s20 = int_to_ptr.vmem [resolvable:$true] %s17_s20  ;;  %s40_s22 = int_to_ptr.vmem [resolvable:$true] %s39_s22 }
  0x10   :  { %s1187_s23 = scalar_lea.vmem %s18_s20, 128  ;;  %p1192_p6 = scmp.lt.s32.totalorder %s18_s20, %s18_s20 }
  0x11   :  { %p1188_p5 = scmp.ne.s32.totalorder %s18_s20, %s1187_s23  ;;  %p1193_p7 = scmp.lt.s32.totalorder %s1187_s23, %s1187_s23 }
  0x13   :  { %p1194_p8 = por %p1193_p7, %p1192_p6 }
  0x15   :  { %p1195_p9 = pnand %p1194_p8, %p1188_p5 }
  0x17   :  { %1198 = shalt.err (!%p1195_p9)
}
  0x18   :  { %20 = dma.hbm_to_vmem [thread:$0]  %s1414_s0, 128, %s18_s20, [#allocation3]  }
  0x19   :  { %s1207_s26 = scalar_lea.vmem %s40_s22, 128  ;;  %p1212_p11 = scmp.lt.s32.totalorder %s40_s22, %s40_s22 }
  0x1a   :  { %p1208_p10 = scmp.ne.s32.totalorder %s40_s22, %s1207_s26  ;;  %p1213_p12 = scmp.lt.s32.totalorder %s1207_s26, %s1207_s26 }
  0x1c   :  { %p1214_p13 = por %p1213_p12, %p1212_p11 }
  0x1e   :  { %p1215_p0 = pnand %p1214_p13, %p1208_p10 }
  0x20   :  { %1218 = shalt.err (!%p1215_p0)
}
  0x21   :  { %42 = dma.hbm_to_vmem [thread:$0]  %s1416_s2, 128, %s40_s22, [#allocation6]  }
  0x22   :  { %1239 = dma.done.wait [#allocation3], 128  }
  0x23   :  { %1240 = vsyncadd [#allocation3], 4294967168 }
  0x24   :  { %1241 = dma.done.wait [#allocation6], 13056  }
  0x25   :  { %1242 = vsyncadd [#allocation6], 4294954240  ;;  %v1250_v0 = vmov 0.0   ;;  %vm1251_vm0 = vmmov 0   ;;  %vm59_vm1 = vcmask 64512   ;;  %v53_v1 = vld [vmem:[#allocation5] sm:$0xff] }
  0x26   :  { %920 = vmatprep.subr.mxu1 %v1250_v0  ;;  %922 = vmatprep.mubr.msk.f32.mxu1 %vm1251_vm0, %v1250_v0  ;;  %v1291_v2 = vld [vmem:[#allocation2] sm:$0xff]  ;;  %v149_v3 = vld [vmem:[#allocation5 + $0x80] sm:$0xff]  ;;  %v147_v5 = vld [vmem:[#allocation5 + $0x70] sm:$0xff]  ;;  %s1252_s0 = smov 32   ;;  %s1253_s2 = smov 64   ;;  %vm434_vm2 = vcmask 261120  }
  0x27   :  { %960 = vmatprep.subr.mxu0 %v1250_v0  ;;  %992 = vmatprep.mubr.msk.f32.mxu0 %vm1251_vm0, %v1250_v0  ;;  %v148_v4 = vld [vmem:[#allocation5 + $0x78] sm:$0xff]  ;;  %v146_v6 = vld [vmem:[#allocation5 + $0x68] sm:$0xff]  ;;  %v145_v7 = vld [vmem:[#allocation5 + $0x60] sm:$0xff]  ;;  %s1254_s28 = smov 96   ;;  %s1255_s29 = smov [#allocation8]  }
  0x28   :  { %921 = vmatpush3.msra.mxu1 %v53_v1  ;;  %v144_v8 = vld [vmem:[#allocation5 + $0x58] sm:$0xff]  ;;  %v143_v9 = vld [vmem:[#allocation5 + $0x50] sm:$0xff]  ;;  %v142_v10 = vld [vmem:[#allocation5 + $0x48] sm:$0xff]  ;;  %s791_s30 = sshll.u32 %s1255_s29, 4  ;;  %s792_s30 = int_to_ptr.vmem [resolvable:$true] %s791_s30 }
  0x29   :  { %923 = vmatmul.mubr.msk.f32.vlgmr.msra.gmra.mxu1 %vm59_vm1, %v1291_v2  ;;  %925 = vmatprep.subr.mxu1 %v1250_v0  ;;  %v141_v11 = vld [vmem:[#allocation5 + $0x40] sm:$0xff]  ;;  %v140_v12 = vld [vmem:[#allocation5 + $0x38] sm:$0xff]  ;;  %v139_v13 = vld [vmem:[#allocation5 + $0x30] sm:$0xff]  ;;  %s1219_s4 = scalar_lea.vmem %s792_s30, 128  ;;  %p1224_p2 = scmp.lt.s32.totalorder %s792_s30, %s792_s30 }
  0x2a   :  { %926 = vmatpush3.msra.mxu1 %v149_v3  ;;  %957 = vmatprep.mubr.msk.f32.mxu1 %vm1251_vm0, %v1250_v0  ;;  %v138_v14 = vld [vmem:[#allocation5 + $0x28] sm:$0xff]  ;;  %v137_v15 = vld [vmem:[#allocation5 + $0x20] sm:$0xff]  ;;  %v136_v16 = vld [vmem:[#allocation5 + $0x18] sm:$0xff]  ;;  %p1220_p1 = scmp.ne.s32.totalorder %s792_s30, %s1219_s4  ;;  %p1225_p3 = scmp.lt.s32.totalorder %s1219_s4, %s1219_s4 }
  0x2b   :  { %927 = vmatprep.subr.mxu1 %v1250_v0  ;;  %v135_v17 = vld [vmem:[#allocation5 + $0x10] sm:$0xff]  ;;  %v134_v18 = vld [vmem:[#allocation5 + $0x8] sm:$0xff]  ;;  %v241_v19 = vld [vmem:[#allocation5 + $0x100] sm:$0xff] }
  0x2c   :  { %928 = vmatpush3.msra.mxu1 %v148_v4  ;;  %v240_v20 = vld [vmem:[#allocation5 + $0xf8] sm:$0xff]  ;;  %961 = vmatpush3.msra.mxu0 %v241_v19  ;;  %v239_v21 = vld [vmem:[#allocation5 + $0xf0] sm:$0xff]  ;;  %v238_v22 = vld [vmem:[#allocation5 + $0xe8] sm:$0xff]  ;;  %p1226_p4 = por %p1225_p3, %p1224_p2 }
  0x2d   :  { %929 = vmatprep.subr.mxu1 %v1250_v0  ;;  %962 = vmatprep.subr.mxu0 %v1250_v0  ;;  %v237_v23 = vld [vmem:[#allocation5 + $0xe0] sm:$0xff]  ;;  %v236_v24 = vld [vmem:[#allocation5 + $0xd8] sm:$0xff]  ;;  %v235_v25 = vld [vmem:[#allocation5 + $0xd0] sm:$0xff] }
  0x2e   :  { %930 = vmatpush3.msra.mxu1 %v147_v5  ;;  %963 = vmatpush3.msra.mxu0 %v240_v20  ;;  %v234_v26 = vld [vmem:[#allocation5 + $0xc8] sm:$0xff]  ;;  %v233_v27 = vld [vmem:[#allocation5 + $0xc0] sm:$0xff]  ;;  %v232_v28 = vld [vmem:[#allocation5 + $0xb8] sm:$0xff]  ;;  %p1227_p5 = pnand %p1226_p4, %p1220_p1 }
  0x2f   :  { %931 = vmatprep.subr.mxu1 %v1250_v0  ;;  %964 = vmatprep.subr.mxu0 %v1250_v0  ;;  %v231_v29 = vld [vmem:[#allocation5 + $0xb0] sm:$0xff]  ;;  %v230_v30 = vld [vmem:[#allocation5 + $0xa8] sm:$0xff]  ;;  %v229_v31 = vld [vmem:[#allocation5 + $0xa0] sm:$0xff] }
  0x30   :  { %932 = vmatpush3.msra.mxu1 %v146_v6  ;;  %965 = vmatpush3.msra.mxu0 %v239_v21  ;;  %v801_v32 = vld [vmem:[#allocation7] ss:$0 sm:$0xff]  ;;  %v228_v37 = vld [vmem:[#allocation5 + $0x98] sm:$0xff]  ;;  %v227_v38 = vld [vmem:[#allocation5 + $0x90] sm:$0xff] }
  0x31   :  { %933 = vmatprep.subr.mxu1 %v1250_v0  ;;  %966 = vmatprep.subr.mxu0 %v1250_v0  ;;  %v226_v39 = vld [vmem:[#allocation5 + $0x88] sm:$0xff]  ;;  %v333_v40 = vld [vmem:[#allocation5 + $0x180] sm:$0xff]  ;;  %v332_v41 = vld [vmem:[#allocation5 + $0x178] sm:$0xff] }
  0x32   :  { %934 = vmatpush3.msra.mxu1 %v145_v7  ;;  %967 = vmatpush3.msra.mxu0 %v238_v22  ;;  %v331_v42 = vld [vmem:[#allocation5 + $0x170] sm:$0xff]  ;;  %v330_v43 = vld [vmem:[#allocation5 + $0x168] sm:$0xff]  ;;  %v329_v44 = vld [vmem:[#allocation5 + $0x160] sm:$0xff] }
  0x33   :  { %935 = vmatprep.subr.mxu1 %v1250_v0  ;;  %968 = vmatprep.subr.mxu0 %v1250_v0  ;;  %v328_v45 = vld [vmem:[#allocation5 + $0x158] sm:$0xff]  ;;  %v327_v46 = vld [vmem:[#allocation5 + $0x150] sm:$0xff]  ;;  %v326_v47 = vld [vmem:[#allocation5 + $0x148] sm:$0xff] }
  0x34   :  { %936 = vmatpush3.msra.mxu1 %v144_v8  ;;  %969 = vmatpush3.msra.mxu0 %v237_v23  ;;  %v325_v48 = vld [vmem:[#allocation5 + $0x140] sm:$0xff]  ;;  %v324_v49 = vld [vmem:[#allocation5 + $0x138] sm:$0xff]  ;;  %v323_v50 = vld [vmem:[#allocation5 + $0x130] sm:$0xff] }
  0x35   :  { %937 = vmatprep.subr.mxu1 %v1250_v0  ;;  %970 = vmatprep.subr.mxu0 %v1250_v0  ;;  %v322_v51 = vld [vmem:[#allocation5 + $0x128] sm:$0xff]  ;;  %v321_v52 = vld [vmem:[#allocation5 + $0x120] sm:$0xff]  ;;  %v320_v58 = vld [vmem:[#allocation5 + $0x118] sm:$0xff] }
  0x36   :  { %938 = vmatpush3.msra.mxu1 %v143_v9  ;;  %971 = vmatpush3.msra.mxu0 %v236_v24  ;;  %v803_v53 = vld [vmem:[#allocation7 + $0x1] ss:$0 sm:$0xff]  ;;  %v319_v59 = vld [vmem:[#allocation5 + $0x110] sm:$0xff]  ;;  %v804_v61 = vld [vmem:[#allocation7 + $0x2] ss:$0 sm:$0xff] }
  0x37   :  { %939 = vmatprep.subr.mxu1 %v1250_v0  ;;  %972 = vmatprep.subr.mxu0 %v1250_v0  ;;  %v318_v60 = vld [vmem:[#allocation5 + $0x108] sm:$0xff]  ;;  %v523_v19 = vld [vmem:[#allocation5 + $0x220] sm:$0xff]  ;;  %v522_v21 = vld [vmem:[#allocation5 + $0x218] sm:$0xff] }
  0x38   :  { %940 = vmatpush3.msra.mxu1 %v142_v10  ;;  %973 = vmatpush3.msra.mxu0 %v235_v25  ;;  %v805_v4 = vld [vmem:[#allocation7 + $0x3] ss:$0 sm:$0xff]  ;;  %v521_v22 = vld [vmem:[#allocation5 + $0x210] sm:$0xff]  ;;  %v519_v23 = vld [vmem:[#allocation5 + $0x200] sm:$0xff] }
  0x39   :  { %941 = vmatprep.subr.mxu1 %v1250_v0  ;;  %974 = vmatprep.subr.mxu0 %v1250_v0  ;;  %v518_v24 = vld [vmem:[#allocation5 + $0x1f8] sm:$0xff]  ;;  %v517_v25 = vld [vmem:[#allocation5 + $0x1f0] sm:$0xff] }
  0x3a   :  { %942 = vmatpush3.msra.mxu1 %v141_v11  ;;  %975 = vmatpush3.msra.mxu0 %v234_v26  ;;  %v425_v11 = vld [vmem:[#allocation5 + $0x1a0] sm:$0xff]  ;;  %v516_v26 = vld [vmem:[#allocation5 + $0x1e8] sm:$0xff] }
  0x3b   :  { %943 = vmatprep.subr.mxu1 %v1250_v0  ;;  %976 = vmatprep.subr.mxu0 %v1250_v0 }
  0x3c   :  { %944 = vmatpush3.msra.mxu1 %v140_v12  ;;  %977 = vmatpush3.msra.mxu0 %v233_v27  ;;  %v424_v12 = vld [vmem:[#allocation5 + $0x198] sm:$0xff]  ;;  %v515_v27 = vld [vmem:[#allocation5 + $0x1e0] sm:$0xff] }
  0x3d   :  { %945 = vmatprep.subr.mxu1 %v1250_v0  ;;  %978 = vmatprep.subr.mxu0 %v1250_v0 }
  0x3e   :  { %946 = vmatpush3.msra.mxu1 %v139_v13  ;;  %979 = vmatpush3.msra.mxu0 %v232_v28  ;;  %v423_v13 = vld [vmem:[#allocation5 + $0x190] sm:$0xff]  ;;  %v514_v28 = vld [vmem:[#allocation5 + $0x1d8] sm:$0xff] }
  0x3f   :  { %947 = vmatprep.subr.mxu1 %v1250_v0  ;;  %980 = vmatprep.subr.mxu0 %v1250_v0 }
  0x40   :  { %948 = vmatpush3.msra.mxu1 %v138_v14  ;;  %981 = vmatpush3.msra.mxu0 %v231_v29  ;;  %v422_v14 = vld [vmem:[#allocation5 + $0x188] sm:$0xff]  ;;  %v513_v29 = vld [vmem:[#allocation5 + $0x1d0] sm:$0xff] }
  0x41   :  { %949 = vmatprep.subr.mxu1 %v1250_v0  ;;  %982 = vmatprep.subr.mxu0 %v1250_v0 }
  0x42   :  { %950 = vmatpush3.msra.mxu1 %v137_v15  ;;  %983 = vmatpush3.msra.mxu0 %v230_v30  ;;  %v512_v30 = vld [vmem:[#allocation5 + $0x1c8] sm:$0xff] }
  0x43   :  { %951 = vmatprep.subr.mxu1 %v1250_v0  ;;  %984 = vmatprep.subr.mxu0 %v1250_v0 }
  0x44   :  { %952 = vmatpush3.msra.mxu1 %v136_v16  ;;  %985 = vmatpush3.msra.mxu0 %v229_v31  ;;  %v511_v31 = vld [vmem:[#allocation5 + $0x1c0] sm:$0xff] }
  0x45   :  { %953 = vmatprep.subr.mxu1 %v1250_v0  ;;  %986 = vmatprep.subr.mxu0 %v1250_v0 }
  0x46   :  { %954 = vmatpush3.msra.mxu1 %v135_v17  ;;  %987 = vmatpush3.msra.mxu0 %v228_v37  ;;  %v613_v37 = vld [vmem:[#allocation5 + $0x290] sm:$0xff] }
  0x47   :  { %955 = vmatprep.subr.mxu1 %v1250_v0  ;;  %988 = vmatprep.subr.mxu0 %v1250_v0 }
  0x48   :  { %956 = vmatpush3.msra.mxu1 %v134_v18  ;;  %989 = vmatpush3.msra.mxu0 %v227_v38  ;;  %v612_v38 = vld [vmem:[#allocation5 + $0x288] sm:$0xff] }
  0x49   :  { %995 = vmatprep.subr.mxu1 %v1250_v0  ;;  %990 = vmatprep.subr.mxu0 %v1250_v0 }
  0x4a   :  { %991 = vmatpush3.msra.mxu0 %v226_v39  ;;  %v611_v39 = vld [vmem:[#allocation5 + $0x280] sm:$0xff] }
  0x4b   :  { %1030 = vmatprep.subr.mxu0 %v1250_v0 }
  0xe9   :  { %v129_v33 = vpop.f32.mrf.mxu1 }
  0xea   :  { %v130_v34 = vadd.f32 %v801_v32, %v129_v33  ;;  %v510_v32 = vld [vmem:[#allocation5 + $0x1b8] sm:$0xff]  ;;  %v509_v33 = vld [vmem:[#allocation5 + $0x1b0] sm:$0xff] }
  0xeb   :  { %v924_v35 = vpop.f32.mrf.mxu1 }
  0xec   :  { %v133_v36 = vmax.f32 %v130_v34, 0.0  ;;  %v508_v34 = vld [vmem:[#allocation5 + $0x1a8] sm:$0xff]  ;;  %v615_v35 = vld [vmem:[#allocation5 + $0x2a0] sm:$0xff] }
  0xee   :  { %958 = vmatmul.mubr.f32.vlgmr.msra.gmra.mxu1 %v133_v36  ;;  %v614_v36 = vld [vmem:[#allocation5 + $0x298] sm:$0xff] }
  0xef   :  { %1027 = vmatprep.mubr.msk.f32.mxu1 %vm1251_vm0, %v1250_v0  ;;  %996 = vmatpush3.msra.mxu1 %v333_v40  ;;  %v610_v40 = vld [vmem:[#allocation5 + $0x278] sm:$0xff] }
  0xf0   :  { %997 = vmatprep.subr.mxu1 %v1250_v0 }
  0xf1   :  { %998 = vmatpush3.msra.mxu1 %v332_v41  ;;  %v609_v41 = vld [vmem:[#allocation5 + $0x270] sm:$0xff] }
  0xf2   :  { %999 = vmatprep.subr.mxu1 %v1250_v0 }
  0xf3   :  { %1000 = vmatpush3.msra.mxu1 %v331_v42  ;;  %v608_v42 = vld [vmem:[#allocation5 + $0x268] sm:$0xff] }
  0xf4   :  { %1001 = vmatprep.subr.mxu1 %v1250_v0 }
  0xf5   :  { %1002 = vmatpush3.msra.mxu1 %v330_v43  ;;  %v607_v43 = vld [vmem:[#allocation5 + $0x260] sm:$0xff] }
  0xf6   :  { %1003 = vmatprep.subr.mxu1 %v1250_v0 }
  0xf7   :  { %1004 = vmatpush3.msra.mxu1 %v329_v44  ;;  %v606_v44 = vld [vmem:[#allocation5 + $0x258] sm:$0xff] }
  0xf8   :  { %1005 = vmatprep.subr.mxu1 %v1250_v0 }
  0xf9   :  { %1006 = vmatpush3.msra.mxu1 %v328_v45  ;;  %v605_v45 = vld [vmem:[#allocation5 + $0x250] sm:$0xff] }
  0xfa   :  { %1007 = vmatprep.subr.mxu1 %v1250_v0 }
  0xfb   :  { %1008 = vmatpush3.msra.mxu1 %v327_v46  ;;  %v604_v46 = vld [vmem:[#allocation5 + $0x248] sm:$0xff] }
  0xfc   :  { %1009 = vmatprep.subr.mxu1 %v1250_v0 }
  0xfd   :  { %1010 = vmatpush3.msra.mxu1 %v326_v47  ;;  %v603_v47 = vld [vmem:[#allocation5 + $0x240] sm:$0xff] }
  0xfe   :  { %1011 = vmatprep.subr.mxu1 %v1250_v0 }
  0xff   :  { %1012 = vmatpush3.msra.mxu1 %v325_v48  ;;  %v806_v48 = vld [vmem:[#allocation7 + $0x4] ss:$0 sm:$0xff] }
 0x100   :  { %1013 = vmatprep.subr.mxu1 %v1250_v0 }
 0x101   :  { %1014 = vmatpush3.msra.mxu1 %v324_v49 }
 0x102   :  { %1015 = vmatprep.subr.mxu1 %v1250_v0 }
 0x103   :  { %1016 = vmatpush3.msra.mxu1 %v323_v50 }
 0x104   :  { %1017 = vmatprep.subr.mxu1 %v1250_v0 }
 0x105   :  { %1018 = vmatpush3.msra.mxu1 %v322_v51 }
 0x106   :  { %1019 = vmatprep.subr.mxu1 %v1250_v0 }
 0x107   :  { %1020 = vmatpush3.msra.mxu1 %v321_v52 }
 0x108   :  { %1021 = vmatprep.subr.mxu1 %v1250_v0 }
 0x109   :  { %1022 = vmatpush3.msra.mxu1 %v320_v58  ;;  %v705_v58 = vld [vmem:[#allocation5 + $0x310] sm:$0xff] }
 0x10a   :  { %1023 = vmatprep.subr.mxu1 %v1250_v0 }
 0x10b   :  { %1024 = vmatpush3.msra.mxu1 %v319_v59  ;;  %v704_v59 = vld [vmem:[#allocation5 + $0x308] sm:$0xff] }
 0x10c   :  { %1025 = vmatprep.subr.mxu1 %v1250_v0 }
 0x10d   :  { %1026 = vmatpush3.msra.mxu1 %v318_v60  ;;  %v703_v60 = vld [vmem:[#allocation5 + $0x300] sm:$0xff] }
 0x10e   :  { %1076 = vmatprep.subr.mxu1 %v1250_v0 }
 0x1ae   :  { %v221_v54 = vpop.f32.mrf.mxu1 }
 0x1af   :  { %v222_v55 = vadd.f32 %v803_v53, %v221_v54  ;;  %v602_v53 = vld [vmem:[#allocation5 + $0x238] sm:$0xff]  ;;  %v601_v54 = vld [vmem:[#allocation5 + $0x230] sm:$0xff] }
 0x1b0   :  { %v959_v56 = vpop.f32.mrf.mxu1 }
 0x1b1   :  { %v225_v57 = vmax.f32 %v222_v55, 0.0  ;;  %v600_v55 = vld [vmem:[#allocation5 + $0x228] sm:$0xff]  ;;  %v707_v56 = vld [vmem:[#allocation5 + $0x320] sm:$0xff] }
 0x1b3   :  { %993 = vmatmul.mubr.f32.vlgmr.msra.gmra.mxu0 %v225_v57  ;;  %v706_v57 = vld [vmem:[#allocation5 + $0x318] sm:$0xff] }
 0x1b4   :  { %1038 = vmatprep.mubr.msk.f32.mxu0 %vm1251_vm0, %v1250_v0  ;;  %1031 = vmatpush3.msra.mxu0 %v425_v11 }
 0x1b5   :  { %1032 = vmatprep.subr.mxu0 %v1250_v0 }
 0x1b6   :  { %1033 = vmatpush3.msra.mxu0 %v424_v12 }
 0x1b7   :  { %1034 = vmatprep.subr.mxu0 %v1250_v0 }
 0x1b8   :  { %1035 = vmatpush3.msra.mxu0 %v423_v13  ;;  %v694_v13 = vld [vmem:[#allocation5 + $0x2b8] sm:$0xff] }
 0x1b9   :  { %1036 = vmatprep.subr.mxu0 %v1250_v0 }
 0x1ba   :  { %1037 = vmatpush3.msra.mxu0 %v422_v14  ;;  %v693_v14 = vld [vmem:[#allocation5 + $0x2b0] sm:$0xff] }
 0x1bb   :  { %1041 = vmatprep.subr.mxu0 %v1250_v0 }
 0x273   :  { %v313_v62 = vpop.f32.mrf.mxu0 }
 0x274   :  { %v314_v63 = vadd.f32 %v804_v61, %v313_v62  ;;  %v702_v61 = vld [vmem:[#allocation5 + $0x2f8] sm:$0xff]  ;;  %v701_v62 = vld [vmem:[#allocation5 + $0x2f0] sm:$0xff] }
 0x275   :  { %v994_v1 = vpop.f32.mrf.mxu0 }
 0x276   :  { %v317_v3 = vmax.f32 %v314_v63, 0.0  ;;  %v700_v63 = vld [vmem:[#allocation5 + $0x2e8] sm:$0xff]  ;;  %v699_v1 = vld [vmem:[#allocation5 + $0x2e0] sm:$0xff] }
 0x278   :  { %1028 = vmatmul.mubr.f32.vlgmr.msra.gmra.mxu1 %v317_v3  ;;  %v698_v3 = vld [vmem:[#allocation5 + $0x2d8] sm:$0xff] }
 0x279   :  { %1108 = vmatprep.mubr.msk.f32.mxu1 %vm1251_vm0, %v1250_v0  ;;  %1077 = vmatpush3.msra.mxu1 %v615_v35 }
 0x27a   :  { %1078 = vmatprep.subr.mxu1 %v1250_v0 }
 0x27b   :  { %1079 = vmatpush3.msra.mxu1 %v614_v36 }
 0x27c   :  { %1080 = vmatprep.subr.mxu1 %v1250_v0 }
 0x27d   :  { %1081 = vmatpush3.msra.mxu1 %v613_v37 }
 0x27e   :  { %1082 = vmatprep.subr.mxu1 %v1250_v0 }
 0x27f   :  { %1083 = vmatpush3.msra.mxu1 %v612_v38 }
 0x280   :  { %1084 = vmatprep.subr.mxu1 %v1250_v0 }
 0x281   :  { %1085 = vmatpush3.msra.mxu1 %v611_v39 }
 0x282   :  { %1086 = vmatprep.subr.mxu1 %v1250_v0 }
 0x283   :  { %1087 = vmatpush3.msra.mxu1 %v610_v40 }
 0x284   :  { %1088 = vmatprep.subr.mxu1 %v1250_v0 }
 0x285   :  { %1089 = vmatpush3.msra.mxu1 %v609_v41 }
 0x286   :  { %1090 = vmatprep.subr.mxu1 %v1250_v0 }
 0x287   :  { %1091 = vmatpush3.msra.mxu1 %v608_v42 }
 0x288   :  { %1092 = vmatprep.subr.mxu1 %v1250_v0 }
 0x289   :  { %1093 = vmatpush3.msra.mxu1 %v607_v43 }
 0x28a   :  { %1094 = vmatprep.subr.mxu1 %v1250_v0 }
 0x28b   :  { %1095 = vmatpush3.msra.mxu1 %v606_v44 }
 0x28c   :  { %1096 = vmatprep.subr.mxu1 %v1250_v0 }
 0x28d   :  { %1097 = vmatpush3.msra.mxu1 %v605_v45 }
 0x28e   :  { %1098 = vmatprep.subr.mxu1 %v1250_v0 }
 0x28f   :  { %1099 = vmatpush3.msra.mxu1 %v604_v46 }
 0x290   :  { %1100 = vmatprep.subr.mxu1 %v1250_v0 }
 0x291   :  { %1101 = vmatpush3.msra.mxu1 %v603_v47 }
 0x292   :  { %1102 = vmatprep.subr.mxu1 %v1250_v0 }
 0x293   :  { %1103 = vmatpush3.msra.mxu1 %v602_v53 }
 0x294   :  { %1104 = vmatprep.subr.mxu1 %v1250_v0 }
 0x295   :  { %1105 = vmatpush3.msra.mxu1 %v601_v54 }
 0x296   :  { %1106 = vmatprep.subr.mxu1 %v1250_v0 }
 0x297   :  { %1107 = vmatpush3.msra.mxu1 %v600_v55 }
 0x338   :  { %v405_v5 = vpop.f32.mrf.mxu1 }
 0x339   :  { %v1351_v6 = vadd.f32 %v805_v4, %v405_v5  ;;  %v697_v4 = vld [vmem:[#allocation5 + $0x2d0] sm:$0xff]  ;;  %v696_v5 = vld [vmem:[#allocation5 + $0x2c8] sm:$0xff] }
 0x33a   :  { %v1029_v7 = vpop.f32.mrf.mxu1 }
 0x33b   :  { %v409_v8 = vmul.f32 0.5, %v1351_v6  ;;  %v695_v7 = vld [vmem:[#allocation5 + $0x2c0] sm:$0xff] }
 0x33d   :  { %v410_v9 = vmul.f32 1.442695, %v409_v8  ;;  %v808_v8 = vld [vmem:[#allocation7 + $0x5] ss:$0 sm:$0xff] }
 0x33f   :  { %1157 = vpow2.f32 %v410_v9 }
 0x34c   :  { %v1158_v10 = vpop.eup %1157 }
 0x34d   :  { %413 = vrot.lane.b32.xlu0 %v1158_v10, %s1252_s0 }
 0x3bf   :  { %v414_v15 = vpop.permute.xlu0 %413 }
 0x3c0   :  { %v416_v16 = vmul.f32 %v414_v15, %v1291_v2  ;;  %v520_v2 = vld [vmem:[#allocation5 + $0x208] sm:$0xff] }
 0x3c1   :  { %v692_v15 = vld [vmem:[#allocation5 + $0x2a8] sm:$0xff] }
 0x3c2   :  { %418 = vrot.lane.b32.xlu0 %v416_v16, %s1253_s2  ;;  %v809_v16 = vld [vmem:[#allocation7 + $0x6] ss:$0 sm:$0xff] }
 0x434   :  { %v419_v17 = vpop.permute.xlu0 %418 }
 0x435   :  { %v421_v18 = vadd.f32 %v419_v17, %v1351_v6 }
 0x437   :  { %432 = vrot.lane.b32.xlu1 %v421_v18, %s1254_s28 }
 0x4a9   :  { %v433_v20 = vpop.permute.xlu1 %432 }
 0x4aa   :  { %1039 = vmatmul.mubr.msk.f32.vlgmr.msra.gmra.mxu0 %vm434_vm2, %v433_v20 }
 0x4ab   :  { %1042 = vmatpush3.msra.mxu0 %v523_v19  ;;  %1073 = vmatprep.mubr.msk.f32.mxu0 %vm1251_vm0, %v1250_v0 }
 0x4ac   :  { %1043 = vmatprep.subr.mxu0 %v1250_v0 }
 0x4ad   :  { %1044 = vmatpush3.msra.mxu0 %v522_v21  ;;  %v810_v21 = vld [vmem:[#allocation7 + $0x7] ss:$0 sm:$0xff] }
 0x4ae   :  { %1045 = vmatprep.subr.mxu0 %v1250_v0 }
 0x4af   :  { %1046 = vmatpush3.msra.mxu0 %v521_v22 }
 0x4b0   :  { %1047 = vmatprep.subr.mxu0 %v1250_v0 }
 0x4b1   :  { %1048 = vmatpush3.msra.mxu0 %v520_v2 }
 0x4b2   :  { %1049 = vmatprep.subr.mxu0 %v1250_v0 }
 0x4b3   :  { %1050 = vmatpush3.msra.mxu0 %v519_v23 }
 0x4b4   :  { %1051 = vmatprep.subr.mxu0 %v1250_v0 }
 0x4b5   :  { %1052 = vmatpush3.msra.mxu0 %v518_v24 }
 0x4b6   :  { %1053 = vmatprep.subr.mxu0 %v1250_v0 }
 0x4b7   :  { %1054 = vmatpush3.msra.mxu0 %v517_v25 }
 0x4b8   :  { %1055 = vmatprep.subr.mxu0 %v1250_v0 }
 0x4b9   :  { %1056 = vmatpush3.msra.mxu0 %v516_v26 }
 0x4ba   :  { %1057 = vmatprep.subr.mxu0 %v1250_v0 }
 0x4bb   :  { %1058 = vmatpush3.msra.mxu0 %v515_v27 }
 0x4bc   :  { %1059 = vmatprep.subr.mxu0 %v1250_v0 }
 0x4bd   :  { %1060 = vmatpush3.msra.mxu0 %v514_v28 }
 0x4be   :  { %1061 = vmatprep.subr.mxu0 %v1250_v0 }
 0x4bf   :  { %1062 = vmatpush3.msra.mxu0 %v513_v29 }
 0x4c0   :  { %1063 = vmatprep.subr.mxu0 %v1250_v0 }
 0x4c1   :  { %1064 = vmatpush3.msra.mxu0 %v512_v30 }
 0x4c2   :  { %1065 = vmatprep.subr.mxu0 %v1250_v0 }
 0x4c3   :  { %1066 = vmatpush3.msra.mxu0 %v511_v31 }
 0x4c4   :  { %1067 = vmatprep.subr.mxu0 %v1250_v0 }
 0x4c5   :  { %1068 = vmatpush3.msra.mxu0 %v510_v32 }
 0x4c6   :  { %1069 = vmatprep.subr.mxu0 %v1250_v0 }
 0x4c7   :  { %1070 = vmatpush3.msra.mxu0 %v509_v33 }
 0x4c8   :  { %1071 = vmatprep.subr.mxu0 %v1250_v0 }
 0x4c9   :  { %1072 = vmatpush3.msra.mxu0 %v508_v34 }
 0x4ca   :  { %1111 = vmatprep.subr.mxu0 %v1250_v0 }
 0x56a   :  { %v503_v49 = vpop.f32.mrf.mxu0 }
 0x56b   :  { %v504_v50 = vadd.f32 %v806_v48, %v503_v49 }
 0x56c   :  { %v1040_v51 = vpop.f32.mrf.mxu0 }
 0x56d   :  { %v507_v52 = vmax.f32 %v504_v50, 0.0 }
 0x56f   :  { %1074 = vmatmul.mubr.f32.vlgmr.msra.gmra.mxu0 %v507_v52 }
 0x570   :  { %1143 = vmatprep.mubr.msk.f32.mxu0 %vm1251_vm0, %v1250_v0  ;;  %1112 = vmatpush3.msra.mxu0 %v707_v56 }
 0x571   :  { %1113 = vmatprep.subr.mxu0 %v1250_v0 }
 0x572   :  { %1114 = vmatpush3.msra.mxu0 %v706_v57 }
 0x573   :  { %1115 = vmatprep.subr.mxu0 %v1250_v0 }
 0x574   :  { %1116 = vmatpush3.msra.mxu0 %v705_v58 }
 0x575   :  { %1117 = vmatprep.subr.mxu0 %v1250_v0 }
 0x576   :  { %1118 = vmatpush3.msra.mxu0 %v704_v59 }
 0x577   :  { %1119 = vmatprep.subr.mxu0 %v1250_v0 }
 0x578   :  { %1120 = vmatpush3.msra.mxu0 %v703_v60 }
 0x579   :  { %1121 = vmatprep.subr.mxu0 %v1250_v0 }
 0x57a   :  { %1122 = vmatpush3.msra.mxu0 %v702_v61 }
 0x57b   :  { %1123 = vmatprep.subr.mxu0 %v1250_v0 }
 0x57c   :  { %1124 = vmatpush3.msra.mxu0 %v701_v62 }
 0x57d   :  { %1125 = vmatprep.subr.mxu0 %v1250_v0 }
 0x57e   :  { %1126 = vmatpush3.msra.mxu0 %v700_v63 }
 0x57f   :  { %1127 = vmatprep.subr.mxu0 %v1250_v0 }
 0x580   :  { %1128 = vmatpush3.msra.mxu0 %v699_v1 }
 0x581   :  { %1129 = vmatprep.subr.mxu0 %v1250_v0 }
 0x582   :  { %1130 = vmatpush3.msra.mxu0 %v698_v3 }
 0x583   :  { %1131 = vmatprep.subr.mxu0 %v1250_v0 }
 0x584   :  { %1132 = vmatpush3.msra.mxu0 %v697_v4 }
 0x585   :  { %1133 = vmatprep.subr.mxu0 %v1250_v0 }
 0x586   :  { %1134 = vmatpush3.msra.mxu0 %v696_v5 }
 0x587   :  { %1135 = vmatprep.subr.mxu0 %v1250_v0 }
 0x588   :  { %1136 = vmatpush3.msra.mxu0 %v695_v7 }
 0x589   :  { %1137 = vmatprep.subr.mxu0 %v1250_v0 }
 0x58a   :  { %1138 = vmatpush3.msra.mxu0 %v694_v13 }
 0x58b   :  { %1139 = vmatprep.subr.mxu0 %v1250_v0 }
 0x58c   :  { %1140 = vmatpush3.msra.mxu0 %v693_v14 }
 0x58d   :  { %1141 = vmatprep.subr.mxu0 %v1250_v0 }
 0x58e   :  { %1142 = vmatpush3.msra.mxu0 %v692_v15 }
 0x62f   :  { %v595_v9 = vpop.f32.mrf.mxu0 }
 0x630   :  { %v596_v10 = vadd.f32 %v808_v8, %v595_v9 }
 0x631   :  { %v1075_v11 = vpop.f32.mrf.mxu0 }
 0x632   :  { %v599_v12 = vmax.f32 %v596_v10, 0.0 }
 0x634   :  { %1109 = vmatmul.mubr.f32.vlgmr.msra.gmra.mxu1 %v599_v12 }
 0x6f4   :  { %v687_v17 = vpop.f32.mrf.mxu1 }
 0x6f5   :  { %v688_v18 = vadd.f32 %v809_v16, %v687_v17 }
 0x6f6   :  { %v1110_v19 = vpop.f32.mrf.mxu1 }
 0x6f7   :  { %v691_v20 = vmax.f32 %v688_v18, 0.0 }
 0x6f9   :  { %1144 = vmatmul.mubr.f32.vlgmr.msra.gmra.mxu0 %v691_v20 }
 0x7b9   :  { %v779_v22 = vpop.f32.mrf.mxu0 }
 0x7ba   :  { %v780_v2 = vadd.f32 %v810_v21, %v779_v22 }
 0x7bb   :  { %v1145_v23 = vpop.f32.mrf.mxu0 }
 0x7bc   :  { %v783_v24 = vadd.f32 %v780_v2, %v1351_v6 }
 0x7be   :  { %784 = vst [vmem:[#allocation8] sm:$0xff] %v783_v24 }
 0x7bf   :  { %1230 = shalt.err (!%p1227_p5)
}
 0x7c0   :  { %794 = dma.vmem_to_hbm [thread:$0]  %s792_s30, 128, %s1417_s3, [#allocation4]  }
 0x7c1   :  { %1243 = dma.done.wait [#allocation4], 128  }
 0x7c2   :  { %1244 = vsyncadd [#allocation4], 4294967168 }
 0x7c3   :  { %798 = vsyncpa [#allocation3], 1 }
 0x7c4   :  { %799 = vsyncpa [#allocation6], 1 }
 0x7c5   :  { %800 = vsyncpa [#allocation4], 1 }

</bundles_post_ra>
